<compile_context>
chip_gen: v7x
topology: tpu7x:2x2x1
jax: 0.10.0
libtpu: 0.0.40
codegen_flags: <defaults>
</compile_context>

<pallas_src>
import functools

import numpy as np

import jax
import jax.numpy as jnp
from jax import lax
from jax.experimental import pallas as pl
from jax.experimental.pallas import tpu as pltpu


# ----------------------- static interpolation matrices ----------------------

def _bilinear_matrix(out_size, in_size):
    """(out_size, in_size) align_corners=True bilinear interpolation matrix."""
    m = np.zeros((out_size, in_size), np.float32)
    scale = (in_size - 1) / (out_size - 1) if out_size > 1 else 0.0
    for o in range(out_size):
        pos = o * scale
        lo = int(np.floor(pos))
        hi = min(lo + 1, in_size - 1)
        frac = pos - lo
        m[o, lo] += 1.0 - frac
        m[o, hi] += frac
    return m


def _round_up(x, m):
    return ((x + m - 1) // m) * m


def _vmem_limit_bytes(per_step_bytes):
    """VMEM budget from actual per-step blocks: 2x (double buffering) plus
    headroom for in-kernel intermediates, clamped so the plan also fits
    v7x's 64 MiB physical VMEM (v5e/v6e have 128 MiB)."""
    need = 2 * per_step_bytes + (8 << 20)
    return int(min(max(need, 16 << 20), 48 << 20))


def _stable_sigmoid(z):
    """sigmoid(z) without inf intermediates (exp only of non-positive args)."""
    p = 1.0 / (1.0 + jnp.exp(-jnp.abs(z)))
    return jnp.where(z >= 0, p, 1.0 - p)


# ------------------------------ fused kernels -------------------------------

def _fused_same_kernel(x_ref, w1_ref, w2_ref, o_ref):
    # x_ref : (1, C, HW)   flattened (lane-dense) feature map, one batch item
    # w1_ref: (hidden, C)  Conv2d(C, C//r, 1, bias=False) weight (squeezed)
    # w2_ref: (C, hidden)  Conv2d(C//r, C, 1, bias=False) weight (squeezed)
    # o_ref : (1, C, HW)   attention-weighted map
    y = x_ref[0]                                                  # (C, HW)
    pooled = jnp.mean(y, axis=1, keepdims=True)                   # (C, 1)
    h = jnp.maximum(
        jnp.dot(w1_ref[...], pooled, preferred_element_type=jnp.float32), 0.0)
    att = _stable_sigmoid(
        jnp.dot(w2_ref[...], h, preferred_element_type=jnp.float32))  # (C, 1)
    o_ref[0] = (y * att).astype(o_ref.dtype)


def _fused_resize_kernel(C, Hs, Ho, Wo,
                         x_ref, rxT_ref, ry_ref, w1_ref, w2_ref, o_ref):
    # x_ref  : (1, C*Hs, Ws)  source map, rows ordered (c, h)
    # rxT_ref: (Ws, Wo)       width interpolation matrix (transposed)
    # ry_ref : (Ho, Hs)       height interpolation matrix
    # o_ref  : (1, C, Ho, Wo) resized + attention-weighted map
    # Separable bilinear resize:
    #   width : one big matmul over all channels/rows
    xw = jnp.dot(x_ref[0], rxT_ref[...],
                 preferred_element_type=jnp.float32)              # (C*Hs, Wo)
    xw = xw.reshape(C, Hs, Wo)                                    # sublane split
    #   height: per-channel contraction with Ry  (einsum 'coh,chw->cow')
    ry_b = jnp.broadcast_to(ry_ref[...][None, :, :], (C, Ho, Hs))
    y = lax.dot_general(ry_b, xw, (((2,), (1,)), ((0,), (0,))),
                        preferred_element_type=jnp.float32)       # (C, Ho, Wo)

    # Channel attention from the resized map (matches reference semantics).
    pooled = jnp.mean(jnp.mean(y, axis=2), axis=1, keepdims=True)  # (C, 1)
    h = jnp.maximum(
        jnp.dot(w1_ref[...], pooled, preferred_element_type=jnp.float32), 0.0)
    att = _stable_sigmoid(
        jnp.dot(w2_ref[...], h, preferred_element_type=jnp.float32))  # (C, 1)

    o_ref[0] = (y * att.reshape(C, 1, 1)).astype(o_ref.dtype)


# ------------------------------ pallas wrappers ------------------------------

def _se_fuse_same(x_flat, w1, w2):
    """x_flat: (N, C, HW) f32 -> (N, C, HW) attention-weighted, one pass."""
    N, C, HW = x_flat.shape
    hidden = w1.shape[0]
    per_step = 4 * (2 * C * HW + 2 * hidden * C)
    return pl.pallas_call(
        _fused_same_kernel,
        out_shape=jax.ShapeDtypeStruct((N, C, HW), jnp.float32),
        grid=(N,),
        in_specs=[
            pl.BlockSpec((1, C, HW), lambda n: (n, 0, 0)),
            pl.BlockSpec((hidden, C), lambda n: (0, 0)),
            pl.BlockSpec((C, hidden), lambda n: (0, 0)),
        ],
        out_specs=pl.BlockSpec((1, C, HW), lambda n: (n, 0, 0)),
        compiler_params=pltpu.CompilerParams(
            dimension_semantics=("parallel",),
            vmem_limit_bytes=_vmem_limit_bytes(per_step)),
    )(x_flat, w1, w2)


def _se_fuse_resize(x2, rxT, ry, w1, w2, C, Hs, Ho, Wo):
    """x2: (N, C*Hs, Ws) f32 -> (N, C, Ho, Wo) resized + weighted, one pass."""
    N, CH, Ws = x2.shape
    hidden = w1.shape[0]
    per_step = 4 * (CH * Ws + Ws * Wo + Ho * Hs + 2 * hidden * C
                    + C * Hs * Wo + C * Ho * Wo)
    kernel = functools.partial(_fused_resize_kernel, C, Hs, Ho, Wo)
    return pl.pallas_call(
        kernel,
        out_shape=jax.ShapeDtypeStruct((N, C, Ho, Wo), jnp.float32),
        grid=(N,),
        in_specs=[
            pl.BlockSpec((1, CH, Ws), lambda n: (n, 0, 0)),
            pl.BlockSpec((Ws, Wo), lambda n: (0, 0)),
            pl.BlockSpec((Ho, Hs), lambda n: (0, 0)),
            pl.BlockSpec((hidden, C), lambda n: (0, 0)),
            pl.BlockSpec((C, hidden), lambda n: (0, 0)),
        ],
        out_specs=pl.BlockSpec((1, C, Ho, Wo), lambda n: (n, 0, 0, 0)),
        compiler_params=pltpu.CompilerParams(
            dimension_semantics=("parallel",),
            vmem_limit_bytes=_vmem_limit_bytes(per_step)),
    )(x2, rxT, ry, w1, w2)


# --------------------------------- forward ----------------------------------

def attention_fusion_forward(feature_maps, params):
    """feature_maps: list of (N, C_i, H_i, W_i) f32 (first map sets target size).
    params: list of (w1, w2) with PyTorch 1x1-conv shapes (C_i//r, C_i),
    (C_i, C_i//r)."""
    N = feature_maps[0].shape[0]
    Ho, Wo = feature_maps[0].shape[2:]

    outs = []
    for fm, (w1, w2) in zip(feature_maps, params):
        _, C, Hs, Ws = fm.shape
        if (Hs, Ws) == (Ho, Wo):
            y = _se_fuse_same(fm.reshape(N, C, Hs * Ws), w1, w2)
            outs.append(y.reshape(N, C, Ho, Wo))
        else:
            # Pad the source height to a multiple of 8 so the in-kernel
            # (C*Hs, Wo) -> (C, Hs, Wo) split stays sublane-aligned.
            Hsp = _round_up(Hs, 8)
            x = fm
            if Hsp != Hs:
                x = jnp.pad(fm, ((0, 0), (0, 0), (0, Hsp - Hs), (0, 0)))
            x2 = x.reshape(N, C * Hsp, Ws)

            rxT = jnp.asarray(_bilinear_matrix(Wo, Ws).T)          # (Ws, Wo)
            ry = np.zeros((Ho, Hsp), np.float32)
            ry[:, :Hs] = _bilinear_matrix(Ho, Hs)                  # (Ho, Hsp)
            outs.append(_se_fuse_resize(x2, rxT, jnp.asarray(ry),
                                        w1, w2, C, Hsp, Ho, Wo))
    return jnp.concatenate(outs, axis=1)


def make_params(key, in_channels_list, reduction):
    params = []
    for i, c in enumerate(in_channels_list):
        hidden = max(c // reduction, 1)
        k1, k2 = jax.random.split(jax.random.fold_in(key, i))
        # PyTorch Conv2d weight shapes (squeezed 1x1): (hidden, c) and (c, hidden).
        w1 = jax.random.normal(k1, (hidden, c), jnp.float32) * 0.1
        w2 = jax.random.normal(k2, (c, hidden), jnp.float32) * 0.1
        params.append((w1, w2))
    return params


# ------------------------- pure-JAX reference (check) ------------------------

def bilinear_resize_align_corners(x, out_h, out_w):
    """NCHW bilinear resize, align_corners=True (matches F.interpolate)."""
    N, C, H, W = x.shape
    if H == out_h and W == out_w:
        return x

    def coords(out_size, in_size):
        if out_size == 1:
            z = jnp.zeros((1,), jnp.float32)
            return z, jnp.zeros((1,), jnp.int32), jnp.zeros((1,), jnp.int32)
        pos = jnp.arange(out_size, dtype=jnp.float32) * (
            (in_size - 1) / (out_size - 1))
        lo = jnp.floor(pos).astype(jnp.int32)
        hi = jnp.minimum(lo + 1, in_size - 1)
        return pos - lo.astype(jnp.float32), lo, hi

    fy, y0, y1 = coords(out_h, H)
    fx, x0, x1 = coords(out_w, W)
    top = x[:, :, y0, :]
    bot = x[:, :, y1, :]
    rows = top * (1.0 - fy)[None, None, :, None] + bot * fy[None, None, :, None]
    left = rows[:, :, :, x0]
    right = rows[:, :, :, x1]
    return left * (1.0 - fx) + right * fx


def reference_forward(feature_maps, params):
    tgt_h, tgt_w = feature_maps[0].shape[2:]
    outs = []
    for fm, (w1, w2) in zip(feature_maps, params):
        xr = bilinear_resize_align_corners(fm, tgt_h, tgt_w)
        pooled = xr.mean(axis=(2, 3))                      # (N, C)
        h = jnp.maximum(pooled @ w1.T, 0.0)                # (N, hidden)
        att = jax.nn.sigmoid(h @ w2.T)                     # (N, C)
        outs.append(xr * att[:, :, None, None])
    return jnp.concatenate(outs, axis=1)


# ----------------------------------- main ------------------------------------

if __name__ == "__main__":
    key = jax.random.PRNGKey(0)
    in_channels_list = [32, 64]
    reduction = 16
    N = 2

    k_fm0, k_fm1, k_p = jax.random.split(key, 3)
    # Feature map 0 defines the target spatial size (16x16); map 1 is 8x8.
    fm0 = jax.random.normal(k_fm0, (N, in_channels_list[0], 16, 16), jnp.float32)
    fm1 = jax.random.normal(k_fm1, (N, in_channels_list[1], 8, 8), jnp.float32)
    feature_maps = [fm0, fm1]

    params = make_params(k_p, in_channels_list, reduction)

    out = jax.block_until_ready(attention_fusion_forward(feature_maps, params))
    ref = jax.block_until_ready(reference_forward(feature_maps, params))

    assert out.shape == (N, sum(in_channels_list), 16, 16), out.shape
    max_err = float(jnp.max(jnp.abs(out - ref)))
    assert jnp.allclose(out, ref, atol=1e-5, rtol=1e-5), max_err
    print("KERNEL_OK")
</pallas_src>

<mosaic_0001>
module attributes {stable_mosaic.version = 11 : i64} {
  func.func @_fused_same_kernel(%arg0: i32, %arg1: memref<1x32x256xf32, #tpu.memory_space<vmem>>, %arg2: memref<2x32xf32, #tpu.memory_space<vmem>>, %arg3: memref<32x2xf32, #tpu.memory_space<vmem>>, %arg4: memref<1x32x256xf32, #tpu.memory_space<vmem>>) attributes {dimension_semantics = [#tpu.dimension_semantics<parallel>], iteration_bounds = array<i64: 2>, scalar_prefetch = 0 : i64, scratch_operands = 0 : i64, tpu.core_type = #tpu.core_type<tc>, window_params = [{transform_indices = @transform_0, window_bounds = array<i64: 1, 32, 256>}, {pipeline_mode = #tpu.pipeline_mode<synchronous>, transform_indices = @transform_1, window_bounds = array<i64: 2, 32>}, {pipeline_mode = #tpu.pipeline_mode<synchronous>, transform_indices = @transform_2, window_bounds = array<i64: 32, 2>}, {transform_indices = @transform_3, window_bounds = array<i64: 1, 32, 256>}]} {
    %c0 = arith.constant 0 : index
    %c0_0 = arith.constant 0 : index
    %c0_1 = arith.constant 0 : index
    %0 = vector.load %arg1[%c0, %c0_0, %c0_1] : memref<1x32x256xf32, #tpu.memory_space<vmem>>, vector<1x32x256xf32>
    %1 = vector.shape_cast %0 : vector<1x32x256xf32> to vector<32x256xf32>
    %cst = arith.constant dense<0.000000e+00> : vector<32xf32>
    %2 = vector.multi_reduction <add>, %1, %cst [1] : vector<32x256xf32> to vector<32xf32>
    %3 = vector.shape_cast %2 : vector<32xf32> to vector<32x1xf32>
    %cst_2 = arith.constant 2.560000e+02 : f32
    %4 = vector.broadcast %cst_2 : f32 to vector<32x1xf32>
    %5 = arith.divf %3, %4 : vector<32x1xf32>
    %c0_3 = arith.constant 0 : index
    %c0_4 = arith.constant 0 : index
    %6 = vector.load %arg2[%c0_3, %c0_4] : memref<2x32xf32, #tpu.memory_space<vmem>>, vector<2x32xf32>
    %cst_5 = arith.constant dense<0.000000e+00> : vector<2x1xf32>
    %7 = tpu.matmul %6, %5, %cst_5 {dimension_numbers = #tpu.dot_dimension_numbers<[1], [0], [0], [1], [0, 0, 1, 1], [], []>} : vector<2x32xf32>, vector<32x1xf32>, vector<2x1xf32> -> vector<2x1xf32>
    %cst_6 = arith.constant 0.000000e+00 : f32
    %8 = vector.broadcast %cst_6 : f32 to vector<2x1xf32>
    %9 = arith.maximumf %7, %8 : vector<2x1xf32>
    %c0_7 = arith.constant 0 : index
    %c0_8 = arith.constant 0 : index
    %10 = vector.load %arg3[%c0_7, %c0_8] : memref<32x2xf32, #tpu.memory_space<vmem>>, vector<32x2xf32>
    %cst_9 = arith.constant dense<0.000000e+00> : vector<32x1xf32>
    %11 = tpu.matmul %10, %9, %cst_9 {dimension_numbers = #tpu.dot_dimension_numbers<[1], [0], [0], [1], [0, 0, 1, 1], [], []>} : vector<32x2xf32>, vector<2x1xf32>, vector<32x1xf32> -> vector<32x1xf32>
    %12 = math.absf %11 : vector<32x1xf32>
    %cst_10 = arith.constant 0.000000e+00 : f32
    %13 = vector.broadcast %cst_10 : f32 to vector<32x1xf32>
    %14 = arith.subf %13, %12 : vector<32x1xf32>
    %15 = math.exp %14 : vector<32x1xf32>
    %cst_11 = arith.constant 1.000000e+00 : f32
    %16 = vector.broadcast %cst_11 : f32 to vector<32x1xf32>
    %17 = arith.addf %16, %15 : vector<32x1xf32>
    %cst_12 = arith.constant 1.000000e+00 : f32
    %18 = vector.broadcast %cst_12 : f32 to vector<32x1xf32>
    %19 = arith.divf %18, %17 : vector<32x1xf32>
    %cst_13 = arith.constant 0.000000e+00 : f32
    %20 = vector.broadcast %cst_13 : f32 to vector<32x1xf32>
    %21 = arith.cmpf oge, %11, %20 : vector<32x1xf32>
    %cst_14 = arith.constant 1.000000e+00 : f32
    %22 = vector.broadcast %cst_14 : f32 to vector<32x1xf32>
    %23 = arith.subf %22, %19 : vector<32x1xf32>
    %24 = arith.select %21, %19, %23 : vector<32x1xi1>, vector<32x1xf32>
    %25 = vector.broadcast %24 : vector<32x1xf32> to vector<32x256xf32>
    %26 = arith.mulf %1, %25 : vector<32x256xf32>
    %c0_15 = arith.constant 0 : index
    %c0_16 = arith.constant 0 : index
    %c0_17 = arith.constant 0 : index
    %27 = vector.load %arg4[%c0_15, %c0_16, %c0_17] : memref<1x32x256xf32, #tpu.memory_space<vmem>>, vector<1x32x256xf32>
    %28 = vector.shape_cast %27 : vector<1x32x256xf32> to vector<32x256xf32>
    %29 = vector.shape_cast %26 : vector<32x256xf32> to vector<1x32x256xf32>
    tpu.vector_store %arg4[%c0_15, %c0_16, %c0_17], %29 {strides = array<i32>} : memref<1x32x256xf32, #tpu.memory_space<vmem>>, vector<1x32x256xf32>,
    return
  }
  func.func @transform_0(%arg0: i32) -> (i32, i32, i32) {
    %c0_i32 = arith.constant 0 : i32
    %c0_i32_0 = arith.constant 0 : i32
    %c0_i32_1 = arith.constant 0 : i32
    return %arg0, %c0_i32, %c0_i32_0 : i32, i32, i32
  }
  func.func @transform_1(%arg0: i32) -> (i32, i32) {
    %c0_i32 = arith.constant 0 : i32
    %c0_i32_0 = arith.constant 0 : i32
    %c0_i32_1 = arith.constant 0 : i32
    return %c0_i32, %c0_i32_0 : i32, i32
  }
  func.func @transform_2(%arg0: i32) -> (i32, i32) {
    %c0_i32 = arith.constant 0 : i32
    %c0_i32_0 = arith.constant 0 : i32
    %c0_i32_1 = arith.constant 0 : i32
    return %c0_i32, %c0_i32_0 : i32, i32
  }
  func.func @transform_3(%arg0: i32) -> (i32, i32, i32) {
    %c0_i32 = arith.constant 0 : i32
    %c0_i32_0 = arith.constant 0 : i32
    %c0_i32_1 = arith.constant 0 : i32
    return %arg0, %c0_i32, %c0_i32_0 : i32, i32, i32
  }
}

</mosaic_0001>

<bundles_post_ra>
// kernel: tpu_custom_call.1
= control target key start
LH: loop header
LB: loop body
LE: loop exit
PB: predicated region body
PF: predicated region fallthrough
CT: control target
= control target key end

     0   :  { %8 = vsyncpa [#allocation3], 0  ;;  %s1029_s0 = inlined_call_operand.hbm [shape: f32[2,32,256], index: 0, kind: input, shape index: {}]   ;;  %s1030_s1 = inlined_call_operand.vmem [shape: f32[2,32], index: 1, kind: input, shape index: {}]   ;;  %s1031_s2 = inlined_call_operand.vmem [shape: f32[32,2], index: 2, kind: input, shape index: {}]   ;;  %s1032_s3 = inlined_call_operand.hbm [shape: f32[2,32,256], index: 3, kind: output, shape index: {}]  }
   0x1   :  { %10 = vsyncpa [#allocation3 + $0x1], 0 }
   0x2   :  { %11 = vsyncpa [#allocation4], 0 }
   0x3   :  { %13 = vsyncpa [#allocation4 + $0x1], 0  ;;  %s816_s12 = smov 0   ;;  %s818_s13 = smov 0  }
   0x4   :  { %s820_s14 = smov 0   ;;  %s822_s15 = smov 0  }
   0x5 LB: > { %s837_s16 = sadd.s32 4294967295, %s784_s15   ;;  %s559_s17 = sadd.s32 4294967294, %s784_s15   ;;  %s784_s15 = sphi %s822_s15, %s1045_s15   ;;  %s780_s14 = sphi %s820_s14, %s1044_s14   ;;  %s776_s13 = sphi %s818_s13, %s1043_s13   ;;  %s772_s12 = sphi %s816_s12, %s1042_s12  }
   0x6   : > { %s841_s18 = sadd.s32 1, %s784_s15   ;;  %s26_s19 = sadd.s32 1, %s780_s14 }
   0x7   : > { %s23_s20 = ssub.s32 %s784_s15, %s841_s18  ;;  %p33_p0 = scmp.ne.s32.totalorder %s780_s14, %s776_s13 }
   0x8   : > { %p24_p1 = scmp.eq.s32.totalorder %s23_s20, 0  ;;  %p34_p2 = scmp.eq.s32.totalorder %s784_s15, 0 }
   0x9   : > { %p39_p3 = scmp.ne.s32.totalorder %s776_s13, %s772_s12  ;;  %p40_p4 = scmp.eq.s32.totalorder %s837_s16, 0 }
   0xa   : > { %s853_s21 = scalar_select %p24_p1, %s780_s14, %s26_s19  }
   0xb   : > { %p855_p5 = por %p34_p2, %p33_p0  ;;  %p859_p6 = por %p40_p4, %p39_p3 }
   0xc   : > { %p105_p7 = scmp.eq.s32.totalorder %s837_s16, 1  ;;  %p111_p8 = scmp.eq.s32.totalorder %s559_s17, 1 }
   0xd   : > { %p628_p10 = scmp.lt.s32.totalorder %s784_s15, 2  ;;  %s137_s26 = sand.u32 1, %s780_s14  }
   0xe   : > { %p866_p11 = por %p105_p7, %p33_p0  ;;  %p870_p12 = por %p111_p8, %p39_p3 }
   0xf   : > { %s579_s27 = sshll.u32 %s784_s15, 10  ;;  %s562_s28 = sshll.u32 %s137_s26, 6 }
  0x10   : > { %s1036_s24 = scalar_select %p866_p11, 1, 0 }
  0x11   : > { %s1037_s25 = scalar_select %p870_p12, 1, 0 }
  0x12   : > { %s879_s4 = scalar_lea.hbm %s1029_s0, %s579_s27  ;;  %s141_s5 = scalar_lea.vmem [#allocation2], %s562_s28 }
  0x13   : > { %s148_s6 = sshll.u32 %s141_s5, 4  ;;  %p883_p13 = pnand %p628_p10, %p855_p5  ;;  %s887_s6 = int_to_ptr.vmem [resolvable:$true] %s148_s6 }
  0x14   : > { %s889_s8 = scalar_lea.sflag [#allocation3], %s137_s26  ;;  %s688_s9 = scalar_lea.hbm %s879_s4, 1024 }
  0x15   : > { %p689_p0 = scmp.ne.s32.totalorder %s879_s4, %s688_s9  ;;  %p690_p1 = pneg %p883_p13 }
  0x16   : > { %s693_s17 = scalar_lea.hbm %s1029_s0, 2048  ;;  %p694_p4 = scmp.lt.u32.totalorder %s879_s4, %s1029_s0 }
  0x17   : > { %p691_p2 = pnand %p690_p1, %p689_p0  ;;  %p695_p5 = scmp.lt.u32.totalorder %s693_s17, %s688_s9 }
  0x18   : > { %p697_p8 = scmp.lt.u32.totalorder %s688_s9, %s879_s4 }
  0x19   : > { %p692_p3 = pneg %p691_p2  ;;  %p696_p7 = por %p695_p5, %p694_p4 }
  0x1b   : > { %p698_p10 = por %p697_p8, %p696_p7 }
  0x1d   : > { %p699_p9 = pnand %p698_p10, %p692_p3 }
  0x1f   : > { %702 = shalt.err (!%p699_p9)
}
  0x20   : > { %s703_s22 = scalar_lea.vmem %s887_s6, 1024  ;;  %s786_s26 = smov [#allocation2]  }
  0x21   : > { %p704_p0 = scmp.ne.s32.totalorder %s887_s6, %s703_s22  ;;  %s708_s27 = sshll.u32 %s786_s26, 4  ;;  %s709_s27 = int_to_ptr.vmem [resolvable:$false] %s708_s27 }
  0x22   : > { %s710_s28 = scalar_lea.vmem %s709_s27, 2048  ;;  %p711_p11 = scmp.lt.s32.totalorder %s887_s6, %s709_s27 }
  0x23   : > { %p706_p2 = pnand %p704_p0, %p690_p1  ;;  %p712_p4 = scmp.lt.s32.totalorder %s710_s28, %s703_s22 }
  0x25   : > { %p707_p12 = pneg %p706_p2  ;;  %p713_p5 = por %p712_p4, %p711_p11 }
  0x27   : > { %p714_p7 = pnand %p713_p5, %p707_p12 }
  0x29   : > { %717 = shalt.err (!%p714_p7)
}
  0x2a   : > { %s787_s29 = smov 256   ;;  %s788_s30 = smov 16  }
  0x2b   : > { %623 = dma.hbm_to_vmem [thread:$0]  (!%p883_p13), %s879_s4, 1024, %s887_s6, %s889_s8, %s787_s29, %s787_s29, %s788_s30  }
  0x2c   : > { %p565_p9 = scmp.ge.s32.totalorder %s784_s15, 1  ;;  %p156_p1 = scmp.lt.s32.totalorder %s784_s15, 3 }
  0x2e   : > { %p157_p3 = pnand %p565_p9, %p156_p1 }
  0x2f   : > { %s920_s5 = sand.u32 (!%p157_p3), 1, %s776_s13  }
  0x30   : > { %160 = sbr.rel (%p157_p3) target bundleno = 832 (0x340), region = 32  ;;  %s566_s9 = sshll.u32 (!%p157_p3), %s920_s5, 6 }
  0x31   : > { %s163_s10 = scalar_lea.sflag (!%p157_p3), [#allocation3], %s920_s5  ;;  %s166_s11 = scalar_lea.vmem (!%p157_p3), [#allocation2], %s566_s9 }
  0x37   : > { %763 = dma.done.wait (%p859_p6), %s163_s10, 1024  }
  0x38   : > { %765 = vsyncadd (%p859_p6), %s163_s10, 4294966272  ;;  %v930_v0 = vld [vmem:[%s166_s11 + $0x20] sm:$0xff]  ;;  %v932_v1 = vld [vmem:[%s166_s11 + $0x28] sm:$0xff]  ;;  %v789_v12 = vmov 0.0|0.0   ;;  %vm790_vm0 = vmmov 0   ;;  %v791_v13 = vmov 0.0  }
  0x39   : > { %v934_v2 = vld [vmem:[%s166_s11] sm:$0xff]  ;;  %v203_v3 = vadd.f32 %v932_v1, %v930_v0  ;;  %v938_v4 = vld [vmem:[%s166_s11 + $0x8] sm:$0xff]  ;;  %v940_v5 = vld [vmem:[%s166_s11 + $0x30] sm:$0xff]  ;;  %610 = vmatprep.subr.bf16.mxu0 %v789_v12  ;;  %599 = vmatprep.mubr.msk.f32.mxu0 %vm790_vm0, %v791_v13  ;;  %vm215_vm1 = vcmask 261120   ;;  %vm294_vm2 = vcmask 15360   ;;  %vm307_vm3 = vcmask 1041408  }
  0x3a   : > { %v942_v6 = vld [vmem:[%s166_s11 + $0x38] sm:$0xff]  ;;  %v197_v7 = vadd.f32 %v938_v4, %v934_v2  ;;  %v946_v8 = vld [vmem:[%s166_s11 + $0x10] sm:$0xff]  ;;  %v214_v24 = vld [vmem:[%s1030_s1] sm:$0x3]  ;;  %v792_v32 = vmov 0   ;;  %s188_s27 = scalar_lea.vmem [#allocation5], %s566_s9 }
  0x3b   : > { %v948_v9 = vld [vmem:[%s166_s11 + $0x18] sm:$0xff]  ;;  %204 = vadd.xlane.f32.xlu1 %v203_v3  ;;  %v206_v10 = vadd.f32 %v942_v6, %v940_v5  ;;  %v290_v25 = vld [vmem:[%s1031_s2] sm:$0xff]  ;;  %v291_v29 = vld [vmem:[%s1031_s2 + $0x8] sm:$0xff]  ;;  %670 = vset.pattern.permute.xlu0 %v792_v32  ;;  %s486_s28 = sshll.u32 %s188_s27, 4  ;;  %s580_s29 = sshll.u32 %s837_s16, 10  ;;  %s978_s28 = int_to_ptr.vmem [resolvable:$true] %s486_s28 }
  0x3c   : > { %198 = vadd.xlane.f32.xlu0 %v197_v7  ;;  %v200_v11 = vadd.f32 %v948_v9, %v946_v8  ;;  %604 = vmatprep.mubr.msk.f32.mxu1 %vm294_vm2, %v290_v25  ;;  %v292_v30 = vld [vmem:[%s1031_s2 + $0x10] sm:$0xff]  ;;  %v293_v31 = vld [vmem:[%s1031_s2 + $0x18] sm:$0xff]  ;;  %s983_s10 = scalar_lea.hbm %s1032_s3, %s580_s29  ;;  %s473_s16 = scalar_lea.sflag [#allocation4], %s920_s5 }
  0x3d   : > { %671 = vset.pattern.permute.xlu1 %v792_v32  ;;  %s718_s11 = scalar_lea.vmem %s978_s28, 1024  ;;  %p1039_p11 = scmp.ne.s32.totalorder %s1036_s24, 0 }
  0x3e   : > { %p719_p6 = scmp.ne.s32.totalorder %s978_s28, %s718_s11  ;;  %s793_s23 = smov [#allocation5]  }
  0x3f   : > { %207 = vadd.xlane.f32.xlu1 %v206_v10  ;;  %s722_s4 = sshll.u32 %s793_s23, 4  ;;  %s723_s4 = int_to_ptr.vmem [resolvable:$false] %s722_s4 }
  0x40   : > { %201 = vadd.xlane.f32.xlu0 %v200_v11  ;;  %p720_p12 = pnand %p719_p6, %p1039_p11  ;;  %s724_s6 = scalar_lea.vmem %s723_s4, 2048 }
  0x41   : > { %p725_p8 = scmp.lt.s32.totalorder %s978_s28, %s723_s4  ;;  %p726_p10 = scmp.lt.s32.totalorder %s724_s6, %s718_s11 }
  0x42   : > { %p721_p13 = pneg %p720_p12 }
  0x43   : > { %p727_p0 = por %p726_p10, %p725_p8 }
  0x45   : > { %p728_p2 = pnand %p727_p0, %p721_p13 }
  0xc8   : > { %v205_v14 = vpop.xlane.xlu1 %204 }
  0xc9   : > { %v199_v15 = vpop.xlane.xlu0 %198  ;;  %v212_v20 = vmul.f32 0.00390625, %v205_v14 }
  0xca   : > { %v210_v18 = vmul.f32 0.00390625, %v199_v15 }
  0xcc   : > { %v208_v16 = vpop.xlane.xlu1 %207 }
  0xcd   : > { %v202_v17 = vpop.xlane.xlu0 %201  ;;  %v213_v21 = vmul.f32 0.00390625, %v208_v16 }
  0xce   : > { %v211_v19 = vmul.f32 0.00390625, %v202_v17 }
  0xcf   : > { %v614_v23 = vpack.c.bf16 %v213_v21, %v212_v20 }
  0xd0   : > { %v611_v22 = vpack.c.bf16 %v211_v19, %v210_v18 }
  0xd2   : > { %612 = vmatpush3.bf16.msra.mxu0 %v611_v22 }
  0xd3   : > { %613 = vmatprep.subr.bf16.mxu0 %v789_v12 }
  0xd6   : > { %615 = vmatpush3.bf16.msra.mxu0 %v614_v23 }
  0xd9   : > { %600 = vmatmul.mubr.msk.f32.vlgmr.msra.gmra.mrb[0].mxu0 %vm215_vm1, %v214_v24 }
 0x1ac   : > { %v285_v26 = vpop.f32.mrb[0].mxu0 }
 0x1ad   : > { %v289_v27 = vmax.f32 %v285_v26, 0.0  ;;  %v601_v28 = vpop.f32.mrb[1].mxu0 }
 0x1af   : > { %602 = vmatprep.subr.msk.mxu1 %vm307_vm3, %v289_v27 }
 0x1b0   : > { %603 = vmatpush3.msk.msra.mxu1 %vm307_vm3, %v289_v27 }
 0x1b1   : > { %605 = vmatmul.mubr.msk.f32.vlgmr.msra.gmra.mrb[0].mxu1 %vm294_vm2, %v291_v29 }
 0x1b2   : > { %607 = vmatprep.mubr.msk.f32.mxu1 %vm294_vm2, %v292_v30 }
 0x1b5   : > { %608 = vmatmul.mubr.msk.f32.gmra.mrb[2].mxu1 %vm294_vm2, %v293_v31 }
 0x284   : > { %v606_v33 = vpop.f32.mrb[0].mxu1 }
 0x285   : > { %v397_v34 = vand.u32 2147483647, %v606_v33  ;;  %v377_v35 = vpop.f32.mrb[1].mxu1  ;;  %vm425_vm4 = vcmp.ge.f32.partialorder %v606_v33, 0.0 }
 0x286   : > { %v396_v36 = vand.u32 2147483647, %v377_v35  ;;  %vm424_vm5 = vcmp.ge.f32.partialorder %v377_v35, 0.0 }
 0x287   : > { %v401_v37 = vsub.f32 0.0, %v397_v34 }
 0x288   : > { %v400_v38 = vsub.f32 0.0, %v396_v36  ;;  %v609_v39 = vpop.f32.mrb[2].mxu1 }
 0x289   : > { %v406_v40 = vmul.f32 1.442695, %v401_v37  ;;  %v399_v41 = vand.u32 2147483647, %v609_v39  ;;  %v387_v42 = vpop.f32.mrb[3].mxu1  ;;  %vm427_vm7 = vcmp.ge.f32.partialorder %v609_v39, 0.0 }
 0x28a   : > { %v404_v43 = vmul.f32 1.442695, %v400_v38  ;;  %v398_v44 = vand.u32 2147483647, %v387_v42  ;;  %vm426_vm6 = vcmp.ge.f32.partialorder %v387_v42, 0.0 }
 0x28b   : > { %672 = vpow2.f32 %v406_v40  ;;  %v403_v45 = vsub.f32 0.0, %v399_v41 }
 0x28c   : > { %674 = vpow2.f32 %v404_v43  ;;  %v402_v46 = vsub.f32 0.0, %v398_v44 }
 0x28d   : > { %v410_v47 = vmul.f32 1.442695, %v403_v45 }
 0x28e   : > { %v408_v48 = vmul.f32 1.442695, %v402_v46 }
 0x28f   : > { %676 = vpow2.f32 %v410_v47 }
 0x290   : > { %678 = vpow2.f32 %v408_v48 }
 0x295   : > { %v673_v49 = vpop.eup %672 }
 0x296   : > { %v675_v50 = vpop.eup %674  ;;  %v413_v51 = vadd.f32 1.0, %v673_v49 }
 0x297   : > { %v412_v52 = vadd.f32 1.0, %v675_v50 }
 0x298   : > { %680 = vrcp.f32 %v413_v51 }
 0x299   : > { %v677_v53 = vpop.eup %676  ;;  %682 = vrcp.f32 %v412_v52 }
 0x29a   : > { %v679_v54 = vpop.eup %678  ;;  %v415_v55 = vadd.f32 1.0, %v677_v53 }
 0x29b   : > { %v414_v56 = vadd.f32 1.0, %v679_v54 }
 0x29c   : > { %684 = vrcp.f32 %v415_v55 }
 0x29d   : > { %686 = vrcp.f32 %v414_v56 }
 0x2a2   : > { %v681_v57 = vpop.eup %680 }
 0x2a3   : > { %v683_v58 = vpop.eup %682  ;;  %v429_v59 = vsub.f32 1.0, %v681_v57 }
 0x2a4   : > { %v428_v60 = vsub.f32 1.0, %v683_v58 }
 0x2a5   : > { %v433_v61 = vsel %vm425_vm4, %v681_v57, %v429_v59 }
 0x2a6   : > { %v685_v62 = vpop.eup %684  ;;  %443 = vperm.xlu1 %671, %v433_v61   ;;  %v432_v63 = vsel %vm424_vm5, %v683_v58, %v428_v60 }
 0x2a7   : > { %v687_v3 = vpop.eup %686  ;;  %438 = vperm.xlu0 %670, %v432_v63   ;;  %v431_v11 = vsub.f32 1.0, %v685_v62 }
 0x2a8   : > { %v430_v7 = vsub.f32 1.0, %v687_v3 }
 0x2a9   : > { %v435_v12 = vsel %vm427_vm7, %v685_v62, %v431_v11 }
 0x2aa   : > { %v434_v10 = vsel %vm426_vm6, %v687_v3, %v430_v7 }
 0x2ab   : > { %448 = vperm.xlu1 %671, %v434_v10  }
 0x2af   : > { %453 = vperm.xlu1 %671, %v435_v12  }
 0x325   : > { %v444_v13 = vpop.permute.xlu1 %443 }
 0x326   : > { %v458_v14 = vmul.f32 %v444_v13, %v946_v8  ;;  %v459_v15 = vmul.f32 %v444_v13, %v948_v9  ;;  %v439_v16 = vpop.permute.xlu0 %438 }
 0x327   : > { %v456_v17 = vmul.f32 %v439_v16, %v934_v2  ;;  %v457_v18 = vmul.f32 %v439_v16, %v938_v4 }
 0x328   : > { %466 = vst [vmem:[%s188_s27 + $0x10] sm:$0xff] %v458_v14  ;;  %467 = vst [vmem:[%s188_s27 + $0x18] sm:$0xff] %v459_v15 }
 0x329   : > { %464 = vst [vmem:[%s188_s27] sm:$0xff] %v456_v17  ;;  %465 = vst [vmem:[%s188_s27 + $0x8] sm:$0xff] %v457_v18 }
 0x32a   : > { %v449_v19 = vpop.permute.xlu1 %448 }
 0x32b   : > { %v460_v20 = vmul.f32 %v449_v19, %v930_v0  ;;  %v461_v8 = vmul.f32 %v449_v19, %v932_v1 }
 0x32d   : > { %468 = vst [vmem:[%s188_s27 + $0x20] sm:$0xff] %v460_v20  ;;  %469 = vst [vmem:[%s188_s27 + $0x28] sm:$0xff] %v461_v8 }
 0x32e   : > { %v454_v2 = vpop.permute.xlu1 %453 }
 0x32f   : > { %v462_v4 = vmul.f32 %v454_v2, %v940_v5  ;;  %v463_v0 = vmul.f32 %v454_v2, %v942_v6 }
 0x331   : > { %470 = vst [vmem:[%s188_s27 + $0x30] sm:$0xff] %v462_v4  ;;  %471 = vst [vmem:[%s188_s27 + $0x38] sm:$0xff] %v463_v0 }
 0x332   : > { %731 = shalt.err (!%p728_p2)
}
 0x333   : > { %s732_s7 = scalar_lea.hbm %s983_s10, 1024  ;;  %s736_s19 = scalar_lea.hbm %s1032_s3, 2048 }
 0x334   : > { %p733_p4 = scmp.ne.s32.totalorder %s983_s10, %s732_s7  ;;  %p737_p9 = scmp.lt.u32.totalorder %s983_s10, %s1032_s3 }
 0x335   : > { %p738_p1 = scmp.lt.u32.totalorder %s736_s19, %s732_s7  ;;  %p740_p6 = scmp.lt.u32.totalorder %s732_s7, %s983_s10 }
 0x336   : > { %p734_p5 = pnand %p733_p4, %p1039_p11 }
 0x337   : > { %p739_p3 = por %p738_p1, %p737_p9 }
 0x338   : > { %p735_p7 = pneg %p734_p5 }
 0x339   : > { %p741_p12 = por %p740_p6, %p739_p3 }
 0x33b   : > { %p742_p13 = pnand %p741_p12, %p735_p7 }
 0x33d   : > { %745 = shalt.err (!%p742_p13)
}
 0x33e   : > { %s794_s26 = smov 256   ;;  %s795_s27 = smov 16  }
 0x33f   : > { %618 = dma.vmem_to_hbm [thread:$0]  (%p1039_p11), %s978_s28, 1024, %s983_s10, %s473_s16, %s794_s26, %s794_s26, %s795_s27  }
 0x340 PF: > { %s501_s29 = sand.u32 1, %s772_s12   ;;  %p1040_p8 = scmp.ne.s32.totalorder %s1037_s25, 0 }
 0x341   : > { %p1041_p10 = scmp.ge.s32.totalorder %s784_s15, 2  ;;  %s502_s30 = scalar_lea.sflag [#allocation4], %s501_s29 }
 0x343   : > { %p625_p0 = pnand %p1041_p10, %p1040_p8 }
 0x345   : > { %767 = dma.done.wait (!%p625_p0), %s502_s30, 1024  }
 0x346   : > { %769 = vsyncadd (!%p625_p0), %s502_s30, 4294966272  ;;  %p16_p2 = scmp.ge.s32.totalorder %s841_s18, 4   ;;  %s1042_s12 = smov %s776_s13 }
 0x347   : > { %s1043_s13 = smov %s780_s14  ;;  %s1044_s14 = smov %s853_s21 }
 0x348   : > { %s1045_s15 = smov %s841_s18  ;;  %18 = sbr.rel (!%p16_p2) target bundleno = 5 (0x5), region = 77 }
 0x34f   :  { %507 = vsyncpa [#allocation3], 1 }
 0x350   :  { %509 = vsyncpa [#allocation3 + $0x1], 1 }
 0x351   :  { %510 = vsyncpa [#allocation4], 1 }
 0x352   :  { %512 = vsyncpa [#allocation4 + $0x1], 1 }

</bundles_post_ra>
